<compile_context>
chip_gen: v6e
topology: v6e:2x2x1
jax: 0.10.0
libtpu: 0.0.40
codegen_flags: <defaults>
</compile_context>

<pallas_src>
import functools

import jax
import jax.numpy as jnp
from jax.experimental import pallas as pl
from jax.experimental.pallas import tpu as pltpu

# ---- model dims (small but structurally identical to the PyTorch module) ----
N_SMALL = 32          # stands in for N = 30000
FEAT_MULT = 31
H1 = 200
H2 = 50
OUT = 2
BN_EPS = 1e-5


# --------------------------------------------------------------------------
# Hardware-aware tiling helpers
# --------------------------------------------------------------------------
def _tpu_vmem_bytes():
    try:
        return int(pltpu.get_tpu_info().vmem_capacity_bytes)
    except Exception:
        return 64 * 1024 * 1024   # conservative: v7x has the smallest VMEM


def _vmem_limit_bytes():
    vmem = _tpu_vmem_bytes()
    return int(min(vmem * 3 // 4, 100 * 1024 * 1024))


def pick_reduction_tile(batch=8):
    """Generation-aware TK for the real-N streamed path (int8 W1, bf16 x).

    Budgets ~vmem/2 for the double-buffered x/W1 tiles, using the lane-padded
    (200 -> 256) W1 VMEM footprint.  With int8 weights this clamps to 32768 on
    v5e/v6e/v7x alike (~19 MB of VMEM at tk=32768), i.e. ~15 reduction steps
    per core at the real K = 930000.
    """
    vmem = _tpu_vmem_bytes()
    lane_padded_h1 = ((H1 + 127) // 128) * 128            # 200 -> 256 lanes
    x_rows = max(((batch + 7) // 8) * 8, 16)               # bf16 sublane pack
    bytes_per_k = lane_padded_h1 * 1 + x_rows * 2           # int8 W1 + bf16 x
    tk = (vmem // 2) // (2 * bytes_per_k)                   # 2 = double buffer
    tk = max(512, min(32768, (tk // 512) * 512))
    return int(tk)


# --------------------------------------------------------------------------
# Shared fused tail piece: BatchNorm1d (train-mode batch stats) + ReLU
# --------------------------------------------------------------------------
def _bn_relu(h, gamma, beta):
    mean = jnp.mean(h, axis=0, keepdims=True)
    var = jnp.mean((h - mean) ** 2, axis=0, keepdims=True)   # biased variance
    scale = gamma * jax.lax.rsqrt(var + BN_EPS)               # folded scale
    return jnp.maximum((h - mean) * scale + beta, 0.0)


# --------------------------------------------------------------------------
# Path 1: ungridded fused kernel (small K that fits VMEM, e.g. the toy config)
# --------------------------------------------------------------------------
def _mlp_small_kernel(x_ref, w1_ref, g1_ref, be1_ref,
                      w2_ref, g2_ref, be2_ref, w3_ref, b3_ref, o_ref):
    h1 = jnp.dot(x_ref[...], w1_ref[...], preferred_element_type=jnp.float32)
    h1 = _bn_relu(h1, g1_ref[...], be1_ref[...])
    h2 = jnp.dot(h1, w2_ref[...], preferred_element_type=jnp.float32)
    h2 = _bn_relu(h2, g2_ref[...], be2_ref[...])
    out = jnp.dot(h2, w3_ref[...], preferred_element_type=jnp.float32) + b3_ref[...]
    o_ref[...] = out.astype(o_ref.dtype)


def prepare_params_small(params):
    """One-time prep for the toy path: bf16 W1 (halves its DMA); b1/b2 dropped
    (exactly cancelled by training-mode BatchNorm mean subtraction)."""
    (w1, b1, g1, be1, w2, b2, g2, be2, w3, b3) = params
    del b1, b2
    return (w1.astype(jnp.bfloat16), g1, be1, w2, g2, be2, w3, b3)


@jax.jit
def neural_network_forward_small(x, prep):
    """x: (B, N_SMALL, FEAT_MULT) float32 -> (B, 2) float32. Single kernel
    invocation, no grid: xf (~16 KB bf16) and W1 (~400 KB bf16) live in VMEM."""
    (w1, g1, be1, w2, g2, be2, w3, b3) = prep
    B = x.shape[0]
    xf = x.reshape(B, -1).astype(w1.dtype)        # torch.flatten(x, 1)
    return pl.pallas_call(
        _mlp_small_kernel,
        out_shape=jax.ShapeDtypeStruct((B, OUT), jnp.float32),
    )(xf, w1, g1, be1, w2, g2, be2, w3, b3)


# --------------------------------------------------------------------------
# Path 2: real-N path = HBM-bound K-tiled reduction (int8 W1, dual-core split)
#         + tiny ungridded tail kernel
# --------------------------------------------------------------------------
def _w1_stream_kernel(x_ref, w1q_ref, part_ref):
    """partial[c] += x_bf16[:, slab] @ dequant(W1_int8[slab, :]); f32 acc."""
    k = pl.program_id(1)

    @pl.when(k == 0)
    def _():
        part_ref[...] = jnp.zeros_like(part_ref)

    # int8 -> bf16 dequant (integers <= 127 are exact in bf16); the per-channel
    # scale is applied after the full K reduction in the tail kernel.
    w = w1q_ref[...].astype(jnp.float32).astype(jnp.bfloat16)
    part_ref[...] += jnp.dot(x_ref[...], w, preferred_element_type=jnp.float32)


def _tail_kernel(part_ref, s1_ref, g1_ref, be1_ref,
                 w2_ref, g2_ref, be2_ref, w3_ref, b3_ref, o_ref):
    p = part_ref[...]
    h1 = (p[0] + p[1]) * s1_ref[...]          # combine core partials + dequant
    h1 = _bn_relu(h1, g1_ref[...], be1_ref[...])
    h2 = jnp.dot(h1, w2_ref[...], preferred_element_type=jnp.float32)   # b2 dropped
    h2 = _bn_relu(h2, g2_ref[...], be2_ref[...])
    out = jnp.dot(h2, w3_ref[...], preferred_element_type=jnp.float32) + b3_ref[...]
    o_ref[...] = out.astype(o_ref.dtype)


def prepare_params_real(params, *, tk):
    """ONE-TIME parameter prep (outside the jitted forward):
      - pad W1's K dim to a multiple of 2*tk (equal halves for the core split),
      - symmetric per-output-channel int8 quantization of W1 (halves HBM
        traffic on the dominant stream); scale kept separately,
      - b1/b2 dropped (cancelled exactly by training-mode BatchNorm)."""
    (w1, b1, g1, be1, w2, b2, g2, be2, w3, b3) = params
    del b1, b2
    K = w1.shape[0]
    kchunk = 2 * tk
    K_pad = ((K + kchunk - 1) // kchunk) * kchunk
    w1p = jnp.pad(w1, ((0, K_pad - K), (0, 0)))
    s1 = jnp.maximum(jnp.max(jnp.abs(w1p), axis=0, keepdims=True) / 127.0, 1e-12)
    w1q = jnp.clip(jnp.round(w1p / s1), -127, 127).astype(jnp.int8)
    return (w1q, s1, g1, be1, w2, g2, be2, w3, b3)


@functools.partial(jax.jit, static_argnames=("tk",))
def neural_network_forward_tiled(x, prep, *, tk):
    """x: (B, n, 31) float32; prep from prepare_params_real. Returns (B, 2)."""
    (w1q, s1, g1, be1, w2, g2, be2, w3, b3) = prep
    B = x.shape[0]
    xf = x.reshape(B, -1)
    K = xf.shape[1]
    K_pad = w1q.shape[0]
    # Only the tiny activation is padded / cast per call; W1 was prepped once.
    xf_p = jnp.pad(xf, ((0, 0), (0, K_pad - K))).astype(jnp.bfloat16)
    n_half = (K_pad // tk) // 2
    assert n_half >= 1 and K_pad == 2 * n_half * tk

    # ---- Phase 1: streamed reduction, half of K per core -------------------
    partials = pl.pallas_call(
        _w1_stream_kernel,
        out_shape=jax.ShapeDtypeStruct((2, B, H1), jnp.float32),
        grid_spec=pltpu.PrefetchScalarGridSpec(
            num_scalar_prefetch=0,
            grid=(2, n_half),                       # (core split, K steps)
            in_specs=[
                pl.BlockSpec((B, tk), lambda c, k: (0, c * n_half + k)),
                pl.BlockSpec((tk, H1), lambda c, k: (c * n_half + k, 0)),
            ],
            # Output-resident f32 accumulator: block index constant along the
            # reduction axis, distinct per core -> no scratch, no conflicts.
            out_specs=pl.BlockSpec((None, B, H1), lambda c, k: (c, 0, 0)),
        ),
        compiler_params=pltpu.CompilerParams(
            dimension_semantics=("parallel", "arbitrary"),
            vmem_limit_bytes=_vmem_limit_bytes()),
    )(xf_p, w1q)

    # ---- Phase 2: tiny ungridded tail (combine + dequant + BN/L2/BN/L3) ----
    return pl.pallas_call(
        _tail_kernel,
        out_shape=jax.ShapeDtypeStruct((B, OUT), jnp.float32),
    )(partials, s1, g1, be1, w2, g2, be2, w3, b3)


# --------------------------------------------------------------------------
# Pure-JAX references (match the PyTorch module, training-mode BatchNorm)
# --------------------------------------------------------------------------
def reference_forward(x, params, first_matmul_dtype=jnp.float32):
    (w1, b1, g1, be1, w2, b2, g2, be2, w3, b3) = params
    xf = x.reshape(x.shape[0], -1)
    h = jnp.dot(xf.astype(first_matmul_dtype), w1.astype(first_matmul_dtype),
                preferred_element_type=jnp.float32) + b1
    m, v = jnp.mean(h, 0, keepdims=True), jnp.var(h, 0, keepdims=True)
    h = jnp.maximum((h - m) * jax.lax.rsqrt(v + BN_EPS) * g1 + be1, 0.0)
    h = h @ w2 + b2
    m, v = jnp.mean(h, 0, keepdims=True), jnp.var(h, 0, keepdims=True)
    h = jnp.maximum((h - m) * jax.lax.rsqrt(v + BN_EPS) * g2 + be2, 0.0)
    return h @ w3 + b3


def reference_forward_quant(x, prep):
    """Quantization-aware reference: same math as the tiled kernel pair."""
    (w1q, s1, g1, be1, w2, g2, be2, w3, b3) = prep
    xf = x.reshape(x.shape[0], -1)
    K = xf.shape[1]
    xf_p = jnp.pad(xf, ((0, 0), (0, w1q.shape[0] - K))).astype(jnp.bfloat16)
    h = jnp.dot(xf_p, w1q.astype(jnp.bfloat16),
                preferred_element_type=jnp.float32) * s1
    h = _bn_relu(h, g1, be1)
    h = _bn_relu(jnp.dot(h, w2, preferred_element_type=jnp.float32), g2, be2)
    return jnp.dot(h, w3, preferred_element_type=jnp.float32) + b3


def init_params(key):
    K = N_SMALL * FEAT_MULT
    k1, k2, k3, k4, k5, k6 = jax.random.split(key, 6)

    def lin(kw, kb, fan_in, fan_out):
        bound = 1.0 / jnp.sqrt(fan_in)
        w = jax.random.uniform(kw, (fan_in, fan_out), jnp.float32, -bound, bound)
        b = jax.random.uniform(kb, (1, fan_out), jnp.float32, -bound, bound)
        return w, b

    w1, b1 = lin(k1, k2, K, H1)
    w2, b2 = lin(k3, k4, H1, H2)
    w3, b3 = lin(k5, k6, H2, OUT)
    # BatchNorm1d defaults: gamma=1, beta=0
    g1, be1 = jnp.ones((1, H1), jnp.float32), jnp.zeros((1, H1), jnp.float32)
    g2, be2 = jnp.ones((1, H2), jnp.float32), jnp.zeros((1, H2), jnp.float32)
    return (w1, b1, g1, be1, w2, b2, g2, be2, w3, b3)


if __name__ == "__main__":
    key = jax.random.PRNGKey(0)
    kx, kp = jax.random.split(key)

    B = 8
    x = jax.random.normal(kx, (B, N_SMALL, FEAT_MULT), jnp.float32)
    params = init_params(kp)

    # ---- Path 1: ungridded fused kernel (toy K = 992 fits in VMEM) ----------
    prep_small = prepare_params_small(params)
    out_small = jax.block_until_ready(neural_network_forward_small(x, prep_small))
    ref_bf16 = reference_forward(x, params, first_matmul_dtype=jnp.bfloat16)
    assert out_small.shape == (B, OUT)
    assert jnp.allclose(out_small, ref_bf16, rtol=2e-2, atol=2e-2), \
        "small-path mismatch vs bf16 reference"

    # ---- Path 2: int8-streamed, dual-core K-split kernel (the real-N path) --
    # At the real K = 930000, TK is chosen generation-aware (clamps to 32768):
    tk_real = pick_reduction_tile(batch=B)
    assert tk_real >= 512
    # Exercise the tiled machinery at the toy K with a small tile so each core
    # half actually has multiple reduction steps (992 -> 1024 -> 2 x 4 x 128).
    tk_test = 128
    prep_real = prepare_params_real(params, tk=tk_test)
    out_tiled = jax.block_until_ready(
        neural_network_forward_tiled(x, prep_real, tk=tk_test))
    ref_q = reference_forward_quant(x, prep_real)
    assert out_tiled.shape == (B, OUT)
    assert jnp.allclose(out_tiled, ref_q, rtol=1e-2, atol=1e-2), \
        "tiled-path mismatch vs quantization-aware reference"

    print("KERNEL_OK")
</pallas_src>

<mosaic_0001>
module attributes {stable_mosaic.version = 11 : i64} {
  func.func @_mlp_small_kernel(%arg0: memref<8x992xbf16, #tpu.memory_space<vmem>>, %arg1: memref<992x200xbf16, #tpu.memory_space<vmem>>, %arg2: memref<1x200xf32, #tpu.memory_space<vmem>>, %arg3: memref<1x200xf32, #tpu.memory_space<vmem>>, %arg4: memref<200x50xf32, #tpu.memory_space<vmem>>, %arg5: memref<1x50xf32, #tpu.memory_space<vmem>>, %arg6: memref<1x50xf32, #tpu.memory_space<vmem>>, %arg7: memref<50x2xf32, #tpu.memory_space<vmem>>, %arg8: memref<1x2xf32, #tpu.memory_space<vmem>>, %arg9: memref<8x2xf32, #tpu.memory_space<vmem>>) attributes {dimension_semantics = [], scalar_prefetch = 0 : i64, scratch_operands = 0 : i64, tpu.core_type = #tpu.core_type<tc>} {
    %c0 = arith.constant 0 : index
    %c0_0 = arith.constant 0 : index
    %0 = vector.load %arg0[%c0, %c0_0] : memref<8x992xbf16, #tpu.memory_space<vmem>>, vector<8x992xbf16>
    %c0_1 = arith.constant 0 : index
    %c0_2 = arith.constant 0 : index
    %1 = vector.load %arg1[%c0_1, %c0_2] : memref<992x200xbf16, #tpu.memory_space<vmem>>, vector<992x200xbf16>
    %cst = arith.constant dense<0.000000e+00> : vector<8x200xf32>
    %2 = tpu.matmul %0, %1, %cst {dimension_numbers = #tpu.dot_dimension_numbers<[1], [0], [0], [1], [0, 0, 1, 1], [], []>} : vector<8x992xbf16>, vector<992x200xbf16>, vector<8x200xf32> -> vector<8x200xf32>
    %c0_3 = arith.constant 0 : index
    %c0_4 = arith.constant 0 : index
    %3 = vector.load %arg2[%c0_3, %c0_4] : memref<1x200xf32, #tpu.memory_space<vmem>>, vector<1x200xf32>
    %c0_5 = arith.constant 0 : index
    %c0_6 = arith.constant 0 : index
    %4 = vector.load %arg3[%c0_5, %c0_6] : memref<1x200xf32, #tpu.memory_space<vmem>>, vector<1x200xf32>
    %cst_7 = arith.constant dense<0.000000e+00> : vector<200xf32>
    %5 = vector.multi_reduction <add>, %2, %cst_7 [0] : vector<8x200xf32> to vector<200xf32>
    %6 = vector.shape_cast %5 : vector<200xf32> to vector<1x200xf32>
    %cst_8 = arith.constant 8.000000e+00 : f32
    %7 = vector.broadcast %cst_8 : f32 to vector<1x200xf32>
    %8 = arith.divf %6, %7 : vector<1x200xf32>
    %9 = vector.broadcast %8 : vector<1x200xf32> to vector<8x200xf32>
    %10 = arith.subf %2, %9 : vector<8x200xf32>
    %11 = arith.mulf %10, %10 : vector<8x200xf32>
    %cst_9 = arith.constant dense<0.000000e+00> : vector<200xf32>
    %12 = vector.multi_reduction <add>, %11, %cst_9 [0] : vector<8x200xf32> to vector<200xf32>
    %13 = vector.shape_cast %12 : vector<200xf32> to vector<1x200xf32>
    %cst_10 = arith.constant 8.000000e+00 : f32
    %14 = vector.broadcast %cst_10 : f32 to vector<1x200xf32>
    %15 = arith.divf %13, %14 : vector<1x200xf32>
    %cst_11 = arith.constant 9.99999974E-6 : f32
    %16 = vector.broadcast %cst_11 : f32 to vector<1x200xf32>
    %17 = arith.addf %15, %16 : vector<1x200xf32>
    %18 = math.rsqrt %17 : vector<1x200xf32>
    %19 = arith.mulf %3, %18 : vector<1x200xf32>
    %20 = vector.broadcast %8 : vector<1x200xf32> to vector<8x200xf32>
    %21 = arith.subf %2, %20 : vector<8x200xf32>
    %22 = vector.broadcast %19 : vector<1x200xf32> to vector<8x200xf32>
    %23 = arith.mulf %21, %22 : vector<8x200xf32>
    %24 = vector.broadcast %4 : vector<1x200xf32> to vector<8x200xf32>
    %25 = arith.addf %23, %24 : vector<8x200xf32>
    %cst_12 = arith.constant 0.000000e+00 : f32
    %26 = vector.broadcast %cst_12 : f32 to vector<8x200xf32>
    %27 = arith.maximumf %25, %26 : vector<8x200xf32>
    %c0_13 = arith.constant 0 : index
    %c0_14 = arith.constant 0 : index
    %28 = vector.load %arg4[%c0_13, %c0_14] : memref<200x50xf32, #tpu.memory_space<vmem>>, vector<200x50xf32>
    %cst_15 = arith.constant dense<0.000000e+00> : vector<8x50xf32>
    %29 = tpu.matmul %27, %28, %cst_15 {dimension_numbers = #tpu.dot_dimension_numbers<[1], [0], [0], [1], [0, 0, 1, 1], [], []>} : vector<8x200xf32>, vector<200x50xf32>, vector<8x50xf32> -> vector<8x50xf32>
    %c0_16 = arith.constant 0 : index
    %c0_17 = arith.constant 0 : index
    %30 = vector.load %arg5[%c0_16, %c0_17] : memref<1x50xf32, #tpu.memory_space<vmem>>, vector<1x50xf32>
    %c0_18 = arith.constant 0 : index
    %c0_19 = arith.constant 0 : index
    %31 = vector.load %arg6[%c0_18, %c0_19] : memref<1x50xf32, #tpu.memory_space<vmem>>, vector<1x50xf32>
    %cst_20 = arith.constant dense<0.000000e+00> : vector<50xf32>
    %32 = vector.multi_reduction <add>, %29, %cst_20 [0] : vector<8x50xf32> to vector<50xf32>
    %33 = vector.shape_cast %32 : vector<50xf32> to vector<1x50xf32>
    %cst_21 = arith.constant 8.000000e+00 : f32
    %34 = vector.broadcast %cst_21 : f32 to vector<1x50xf32>
    %35 = arith.divf %33, %34 : vector<1x50xf32>
    %36 = vector.broadcast %35 : vector<1x50xf32> to vector<8x50xf32>
    %37 = arith.subf %29, %36 : vector<8x50xf32>
    %38 = arith.mulf %37, %37 : vector<8x50xf32>
    %cst_22 = arith.constant dense<0.000000e+00> : vector<50xf32>
    %39 = vector.multi_reduction <add>, %38, %cst_22 [0] : vector<8x50xf32> to vector<50xf32>
    %40 = vector.shape_cast %39 : vector<50xf32> to vector<1x50xf32>
    %cst_23 = arith.constant 8.000000e+00 : f32
    %41 = vector.broadcast %cst_23 : f32 to vector<1x50xf32>
    %42 = arith.divf %40, %41 : vector<1x50xf32>
    %cst_24 = arith.constant 9.99999974E-6 : f32
    %43 = vector.broadcast %cst_24 : f32 to vector<1x50xf32>
    %44 = arith.addf %42, %43 : vector<1x50xf32>
    %45 = math.rsqrt %44 : vector<1x50xf32>
    %46 = arith.mulf %30, %45 : vector<1x50xf32>
    %47 = vector.broadcast %35 : vector<1x50xf32> to vector<8x50xf32>
    %48 = arith.subf %29, %47 : vector<8x50xf32>
    %49 = vector.broadcast %46 : vector<1x50xf32> to vector<8x50xf32>
    %50 = arith.mulf %48, %49 : vector<8x50xf32>
    %51 = vector.broadcast %31 : vector<1x50xf32> to vector<8x50xf32>
    %52 = arith.addf %50, %51 : vector<8x50xf32>
    %cst_25 = arith.constant 0.000000e+00 : f32
    %53 = vector.broadcast %cst_25 : f32 to vector<8x50xf32>
    %54 = arith.maximumf %52, %53 : vector<8x50xf32>
    %c0_26 = arith.constant 0 : index
    %c0_27 = arith.constant 0 : index
    %55 = vector.load %arg7[%c0_26, %c0_27] : memref<50x2xf32, #tpu.memory_space<vmem>>, vector<50x2xf32>
    %cst_28 = arith.constant dense<0.000000e+00> : vector<8x2xf32>
    %56 = tpu.matmul %54, %55, %cst_28 {dimension_numbers = #tpu.dot_dimension_numbers<[1], [0], [0], [1], [0, 0, 1, 1], [], []>} : vector<8x50xf32>, vector<50x2xf32>, vector<8x2xf32> -> vector<8x2xf32>
    %c0_29 = arith.constant 0 : index
    %c0_30 = arith.constant 0 : index
    %57 = vector.load %arg8[%c0_29, %c0_30] : memref<1x2xf32, #tpu.memory_space<vmem>>, vector<1x2xf32>
    %58 = vector.broadcast %57 : vector<1x2xf32> to vector<8x2xf32>
    %59 = arith.addf %56, %58 : vector<8x2xf32>
    %c0_31 = arith.constant 0 : index
    %c0_32 = arith.constant 0 : index
    %60 = vector.load %arg9[%c0_31, %c0_32] : memref<8x2xf32, #tpu.memory_space<vmem>>, vector<8x2xf32>
    tpu.vector_store %arg9[%c0_31, %c0_32], %59 {strides = array<i32>} : memref<8x2xf32, #tpu.memory_space<vmem>>, vector<8x2xf32>,
    return
  }
}

</mosaic_0001>

<bundles_post_ra>
// kernel: neural_network_forward_small.1
= control target key start
LH: loop header
LB: loop body
LE: loop exit
PB: predicated region body
PF: predicated region fallthrough
CT: control target
= control target key end

     0   :  { %vm808_vm0 = vcmask 785408   ;;  %vm984_vm1 = vcmask 588800   ;;  %vm1219_vm2 = vcmask 1041408   ;;  %vm1667_vm3 = vmmov 0   ;;  %s2272_s1 = inlined_call_operand.vmem [shape: bf16[992,200], index: 1, kind: input, shape index: {}]   ;;  %s2273_s0 = inlined_call_operand.vmem [shape: bf16[8,992], index: 0, kind: input, shape index: {}]   ;;  %s2274_s4 = inlined_call_operand.vmem [shape: f32[200,50], index: 4, kind: input, shape index: {}]   ;;  %s2275_s2 = inlined_call_operand.vmem [shape: f32[1,200], index: 2, kind: input, shape index: {}]   ;;  %s2276_s3 = inlined_call_operand.vmem [shape: f32[1,200], index: 3, kind: input, shape index: {}]   ;;  %s2277_s7 = inlined_call_operand.vmem [shape: f32[50,2], index: 7, kind: input, shape index: {}]   ;;  %s2278_s5 = inlined_call_operand.vmem [shape: f32[1,50], index: 5, kind: input, shape index: {}]   ;;  %s2279_s6 = inlined_call_operand.vmem [shape: f32[1,50], index: 6, kind: input, shape index: {}]   ;;  %s2280_s8 = inlined_call_operand.vmem [shape: f32[1,2], index: 8, kind: input, shape index: {}]   ;;  %s2281_s9 = inlined_call_operand.vmem [shape: f32[8,2], index: 9, kind: output, shape index: {}]  }
   0x1   :  { %v1465_v0 = vld [vmem:[%s2272_s1 + $0x74] ss:$8 sps:$4 sm:$0xff]   ;;  %v1469_v2 = vld [vmem:[%s2272_s1 + $0x70] ss:$8 sps:$4 sm:$0xff]   ;;  %v1471_v4 = vld [vmem:[%s2272_s1 + $0x64] ss:$8 sps:$4 sm:$0xff]  }
   0x2   :  { %v1467_v1 = vld [vmem:[%s2272_s1 + $0x174] ss:$8 sps:$4 sm:$0xff]   ;;  %812 = vmatprep.subr.bf16.mxu0 %v1465_v0  ;;  %v1470_v3 = vld [vmem:[%s2272_s1 + $0x170] ss:$8 sps:$4 sm:$0xff]   ;;  %v1473_v5 = vld [vmem:[%s2272_s1 + $0x164] ss:$8 sps:$4 sm:$0xff]  }
   0x3   :  { %853 = vmatprep.subr.bf16.mxu1 %v1467_v1  ;;  %813 = vmatpush1.bf16.msra.mxu0 %v1469_v2  ;;  %v1475_v6 = vld [vmem:[%s2272_s1 + $0x60] ss:$8 sps:$4 sm:$0xff]   ;;  %v1477_v8 = vld [vmem:[%s2272_s1 + $0x54] ss:$8 sps:$4 sm:$0xff]   ;;  %v1481_v10 = vld [vmem:[%s2272_s1 + $0x50] ss:$8 sps:$4 sm:$0xff]  }
   0x4   :  { %854 = vmatpush1.bf16.msra.mxu1 %v1470_v3  ;;  %814 = vmatprep.subr.bf16.mxu0 %v1471_v4  ;;  %v1476_v7 = vld [vmem:[%s2272_s1 + $0x160] ss:$8 sps:$4 sm:$0xff]   ;;  %v1479_v9 = vld [vmem:[%s2272_s1 + $0x154] ss:$8 sps:$4 sm:$0xff]   ;;  %v1482_v11 = vld [vmem:[%s2272_s1 + $0x150] ss:$8 sps:$4 sm:$0xff]  }
   0x5   :  { %855 = vmatprep.subr.bf16.mxu1 %v1473_v5  ;;  %v1483_v12 = vld [vmem:[%s2272_s1 + $0x44] ss:$8 sps:$4 sm:$0xff]   ;;  %v1487_v14 = vld [vmem:[%s2272_s1 + $0x40] ss:$8 sps:$4 sm:$0xff]   ;;  %v1489_v16 = vld [vmem:[%s2272_s1 + $0x34] ss:$8 sps:$4 sm:$0xff]  }
   0x6   :  { %v1485_v13 = vld [vmem:[%s2272_s1 + $0x144] ss:$8 sps:$4 sm:$0xff]   ;;  %v1488_v15 = vld [vmem:[%s2272_s1 + $0x140] ss:$8 sps:$4 sm:$0xff]   ;;  %v1491_v17 = vld [vmem:[%s2272_s1 + $0x134] ss:$8 sps:$4 sm:$0xff]  }
   0x7   :  { %815 = vmatpush1.bf16.msra.mxu0 %v1475_v6  ;;  %v1493_v18 = vld [vmem:[%s2272_s1 + $0x30] ss:$8 sps:$4 sm:$0xff]   ;;  %v1495_v20 = vld [vmem:[%s2272_s1 + $0x24] ss:$8 sps:$4 sm:$0xff]   ;;  %v1499_v22 = vld [vmem:[%s2272_s1 + $0x20] ss:$8 sps:$4 sm:$0xff]  }
   0x8   :  { %856 = vmatpush1.bf16.msra.mxu1 %v1476_v7  ;;  %816 = vmatprep.subr.bf16.mxu0 %v1477_v8  ;;  %v1494_v19 = vld [vmem:[%s2272_s1 + $0x130] ss:$8 sps:$4 sm:$0xff]   ;;  %v1497_v21 = vld [vmem:[%s2272_s1 + $0x124] ss:$8 sps:$4 sm:$0xff]   ;;  %v1500_v23 = vld [vmem:[%s2272_s1 + $0x120] ss:$8 sps:$4 sm:$0xff]  }
   0x9   :  { %857 = vmatprep.subr.bf16.mxu1 %v1479_v9  ;;  %v1501_v24 = vld [vmem:[%s2272_s1 + $0x14] ss:$8 sps:$4 sm:$0xff]   ;;  %v1505_v26 = vld [vmem:[%s2272_s1 + $0x10] ss:$8 sps:$4 sm:$0xff]   ;;  %v1507_v28 = vld [vmem:[%s2272_s1 + $0x4] ss:$8 sps:$4 sm:$0xff]  }
   0xa   :  { %v1503_v25 = vld [vmem:[%s2272_s1 + $0x114] ss:$8 sps:$4 sm:$0xff]   ;;  %v1506_v27 = vld [vmem:[%s2272_s1 + $0x110] ss:$8 sps:$4 sm:$0xff]   ;;  %v1509_v29 = vld [vmem:[%s2272_s1 + $0x104] ss:$8 sps:$4 sm:$0xff]  }
   0xb   :  { %817 = vmatpush1.bf16.msra.mxu0 %v1481_v10  ;;  %v1511_v30 = vld [vmem:[%s2272_s1] ss:$8 sps:$4 sm:$0xff]   ;;  %v1513_v32 = vld [vmem:[%s2272_s1 + $0xf4] ss:$8 sps:$4 sm:$0xff]   ;;  %v1517_v34 = vld [vmem:[%s2272_s1 + $0xf0] ss:$8 sps:$4 sm:$0xff]  }
   0xc   :  { %858 = vmatpush1.bf16.msra.mxu1 %v1482_v11  ;;  %818 = vmatprep.subr.bf16.mxu0 %v1483_v12  ;;  %v1512_v31 = vld [vmem:[%s2272_s1 + $0x100] ss:$8 sps:$4 sm:$0xff]   ;;  %v1515_v33 = vld [vmem:[%s2272_s1 + $0x1f4] ss:$8 sps:$4 sm:$0xff]   ;;  %v1518_v35 = vld [vmem:[%s2272_s1 + $0x1f0] ss:$8 sps:$4 sm:$0xff]  }
   0xd   :  { %859 = vmatprep.subr.bf16.mxu1 %v1485_v13  ;;  %v1519_v36 = vld [vmem:[%s2272_s1 + $0xe4] ss:$8 sps:$4 sm:$0xff]   ;;  %v1523_v38 = vld [vmem:[%s2272_s1 + $0xe0] ss:$8 sps:$4 sm:$0xff]   ;;  %v1525_v40 = vld [vmem:[%s2272_s1 + $0xd4] ss:$8 sps:$4 sm:$0xff]  }
   0xe   :  { %v1521_v37 = vld [vmem:[%s2272_s1 + $0x1e4] ss:$8 sps:$4 sm:$0xff]   ;;  %v1524_v39 = vld [vmem:[%s2272_s1 + $0x1e0] ss:$8 sps:$4 sm:$0xff]   ;;  %v1527_v41 = vld [vmem:[%s2272_s1 + $0x1d4] ss:$8 sps:$4 sm:$0xff]  }
   0xf   :  { %819 = vmatpush1.bf16.msra.mxu0 %v1487_v14  ;;  %v1529_v42 = vld [vmem:[%s2272_s1 + $0xd0] ss:$8 sps:$4 sm:$0xff]   ;;  %v1531_v44 = vld [vmem:[%s2272_s1 + $0xc4] ss:$8 sps:$4 sm:$0xff]   ;;  %v1535_v49 = vld [vmem:[%s2272_s1 + $0xc0] ss:$8 sps:$4 sm:$0xff]  }
  0x10   :  { %860 = vmatpush1.bf16.msra.mxu1 %v1488_v15  ;;  %820 = vmatprep.subr.bf16.mxu0 %v1489_v16  ;;  %v1530_v43 = vld [vmem:[%s2272_s1 + $0x1d0] ss:$8 sps:$4 sm:$0xff]   ;;  %v1533_v45 = vld [vmem:[%s2272_s1 + $0x1c4] ss:$8 sps:$4 sm:$0xff]   ;;  %v1536_v50 = vld [vmem:[%s2272_s1 + $0x1c0] ss:$8 sps:$4 sm:$0xff]  }
  0x11   :  { %861 = vmatprep.subr.bf16.mxu1 %v1491_v17  ;;  %v33_v46 = vld [vmem:[%s2273_s0] sm:$0xff]  ;;  %v34_v48 = vld [vmem:[%s2273_s0 + $0x8] sm:$0xff]  ;;  %v1537_v52 = vld [vmem:[%s2272_s1 + $0xb4] ss:$8 sps:$4 sm:$0xff]   ;;  %vm1165_vm4 = vcmask 408576   ;;  %vm1293_vm5 = vcmask 15360  }
  0x12   :  { %v1300_v47 = vcombine.high %v33_v46, %v33_v46  ;;  %v1302_v51 = vcombine.high %v34_v48, %v34_v48  ;;  %v1539_v53 = vld [vmem:[%s2272_s1 + $0x1b4] ss:$8 sps:$4 sm:$0xff]   ;;  %v1541_v54 = vld [vmem:[%s2272_s1 + $0xb0] ss:$8 sps:$4 sm:$0xff]   ;;  %v1543_v56 = vld [vmem:[%s2272_s1 + $0xa4] ss:$8 sps:$4 sm:$0xff]   ;;  %v1299_v6 = vcombine.low %v33_v46, %v33_v46  ;;  %v1301_v7 = vcombine.low %v34_v48, %v34_v48 }
  0x13   :  { %821 = vmatpush1.bf16.msra.mxu0 %v1493_v18  ;;  %v1542_v55 = vld [vmem:[%s2272_s1 + $0x1b0] ss:$8 sps:$4 sm:$0xff]   ;;  %v1545_v57 = vld [vmem:[%s2272_s1 + $0x1a4] ss:$8 sps:$4 sm:$0xff]   ;;  %v1547_v58 = vld [vmem:[%s2272_s1 + $0xa0] ss:$8 sps:$4 sm:$0xff]  }
  0x14   :  { %862 = vmatpush1.bf16.msra.mxu1 %v1494_v19  ;;  %822 = vmatprep.subr.bf16.mxu0 %v1495_v20  ;;  %v1548_v59 = vld [vmem:[%s2272_s1 + $0x1a0] ss:$8 sps:$4 sm:$0xff]   ;;  %v1549_v60 = vld [vmem:[%s2272_s1 + $0x94] ss:$8 sps:$4 sm:$0xff]   ;;  %v1553_v62 = vld [vmem:[%s2272_s1 + $0x90] ss:$8 sps:$4 sm:$0xff]  }
  0x15   :  { %863 = vmatprep.subr.bf16.mxu1 %v1497_v21  ;;  %844 = vmatprep.mubr.bf16.mxu0 %v1300_v47  ;;  %v1551_v61 = vld [vmem:[%s2272_s1 + $0x194] ss:$8 sps:$4 sm:$0xff]   ;;  %v1554_v63 = vld [vmem:[%s2272_s1 + $0x190] ss:$8 sps:$4 sm:$0xff]   ;;  %v1555_v0 = vld [vmem:[%s2272_s1 + $0x84] ss:$8 sps:$4 sm:$0xff]  }
  0x16   :  { %885 = vmatprep.mubr.bf16.mxu1 %v1302_v51  ;;  %v1557_v1 = vld [vmem:[%s2272_s1 + $0x184] ss:$8 sps:$4 sm:$0xff]   ;;  %v1559_v2 = vld [vmem:[%s2272_s1 + $0x80] ss:$8 sps:$4 sm:$0xff]   ;;  %v1567_v4 = vld [vmem:[%s2272_s1 + $0x274] ss:$8 sps:$4 sm:$0xff]  }
  0x17   :  { %823 = vmatpush1.bf16.msra.mxu0 %v1499_v22  ;;  %v1560_v3 = vld [vmem:[%s2272_s1 + $0x180] ss:$8 sps:$4 sm:$0xff]   ;;  %v1573_v5 = vld [vmem:[%s2272_s1 + $0x374] ss:$8 sps:$4 sm:$0xff]   ;;  %v1565_v8 = vld [vmem:[%s2272_s1 + $0x270] ss:$8 sps:$4 sm:$0xff]  }
  0x18   :  { %864 = vmatpush1.bf16.msra.mxu1 %v1500_v23  ;;  %824 = vmatprep.subr.bf16.mxu0 %v1501_v24  ;;  %v1571_v9 = vld [vmem:[%s2272_s1 + $0x370] ss:$8 sps:$4 sm:$0xff]   ;;  %v1570_v10 = vld [vmem:[%s2272_s1 + $0x264] ss:$8 sps:$4 sm:$0xff]   ;;  %v1568_v12 = vld [vmem:[%s2272_s1 + $0x260] ss:$8 sps:$4 sm:$0xff]  }
  0x19   :  { %865 = vmatprep.subr.bf16.mxu1 %v1503_v25  ;;  %v1579_v11 = vld [vmem:[%s2272_s1 + $0x364] ss:$8 sps:$4 sm:$0xff]   ;;  %v1577_v13 = vld [vmem:[%s2272_s1 + $0x360] ss:$8 sps:$4 sm:$0xff]   ;;  %v1576_v14 = vld [vmem:[%s2272_s1 + $0x254] ss:$8 sps:$4 sm:$0xff]  }
  0x1a   :  { %v1585_v15 = vld [vmem:[%s2272_s1 + $0x354] ss:$8 sps:$4 sm:$0xff]   ;;  %v1574_v16 = vld [vmem:[%s2272_s1 + $0x250] ss:$8 sps:$4 sm:$0xff]   ;;  %v1582_v18 = vld [vmem:[%s2272_s1 + $0x244] ss:$8 sps:$4 sm:$0xff]  }
  0x1b   :  { %825 = vmatpush1.bf16.msra.mxu0 %v1505_v26  ;;  %v1583_v17 = vld [vmem:[%s2272_s1 + $0x350] ss:$8 sps:$4 sm:$0xff]   ;;  %v1591_v19 = vld [vmem:[%s2272_s1 + $0x344] ss:$8 sps:$4 sm:$0xff]   ;;  %v1580_v20 = vld [vmem:[%s2272_s1 + $0x240] ss:$8 sps:$4 sm:$0xff]  }
  0x1c   :  { %866 = vmatpush1.bf16.msra.mxu1 %v1506_v27  ;;  %826 = vmatprep.subr.bf16.mxu0 %v1507_v28  ;;  %v1589_v21 = vld [vmem:[%s2272_s1 + $0x340] ss:$8 sps:$4 sm:$0xff]   ;;  %v1588_v22 = vld [vmem:[%s2272_s1 + $0x234] ss:$8 sps:$4 sm:$0xff]   ;;  %v1586_v24 = vld [vmem:[%s2272_s1 + $0x230] ss:$8 sps:$4 sm:$0xff]  }
  0x1d   :  { %867 = vmatprep.subr.bf16.mxu1 %v1509_v29  ;;  %v1597_v23 = vld [vmem:[%s2272_s1 + $0x334] ss:$8 sps:$4 sm:$0xff]   ;;  %v1595_v25 = vld [vmem:[%s2272_s1 + $0x330] ss:$8 sps:$4 sm:$0xff]   ;;  %v1594_v26 = vld [vmem:[%s2272_s1 + $0x224] ss:$8 sps:$4 sm:$0xff]  }
  0x1e   :  { %v1603_v27 = vld [vmem:[%s2272_s1 + $0x324] ss:$8 sps:$4 sm:$0xff]   ;;  %v1985_v28 = vld [vmem:[%s2273_s0 + $0x18] sm:$0xff]  ;;  %v1616_v48 = vld [vmem:[%s2272_s1 + $0x2e0] ss:$8 sps:$4 sm:$0xff]  }
  0x1f   :  { %827 = vmatpush1.bf16.msra.mxu0 %v1511_v30  ;;  %v1306_v29 = vcombine.high %v1985_v28, %v1985_v28  ;;  %v1992_v30 = vld [vmem:[%s2273_s0 + $0x10] sm:$0xff]  ;;  %v1618_v46 = vld [vmem:[%s2272_s1 + $0x2e4] ss:$8 sps:$4 sm:$0xff]  }
  0x20   :  { %868 = vmatpush1.bf16.msra.mxu1 %v1512_v31  ;;  %828 = vmatprep.subr.bf16.mxu0 %v1513_v32  ;;  %v1592_v31 = vld [vmem:[%s2272_s1 + $0x220] ss:$8 sps:$4 sm:$0xff]   ;;  %v1627_v47 = vld [vmem:[%s2272_s1 + $0x3c4] ss:$8 sps:$4 sm:$0xff]   ;;  %v1633_v51 = vld [vmem:[%s2272_s1 + $0x3b4] ss:$8 sps:$4 sm:$0xff]  }
  0x21   :  { %869 = vmatprep.subr.bf16.mxu1 %v1515_v33  ;;  %v1601_v32 = vld [vmem:[%s2272_s1 + $0x320] ss:$8 sps:$4 sm:$0xff]   ;;  %v1304_v33 = vcombine.high %v1992_v30, %v1992_v30 }
  0x23   :  { %829 = vmatpush2.bf16.msra.mxu0 %v1517_v34  ;;  %v1600_v34 = vld [vmem:[%s2272_s1 + $0x214] ss:$8 sps:$4 sm:$0xff]  }
  0x24   :  { %870 = vmatpush2.bf16.msra.mxu1 %v1518_v35  ;;  %830 = vmatprep.subr.bf16.mxu0 %v1519_v36  ;;  %v1609_v35 = vld [vmem:[%s2272_s1 + $0x314] ss:$8 sps:$4 sm:$0xff]   ;;  %v1598_v36 = vld [vmem:[%s2272_s1 + $0x210] ss:$8 sps:$4 sm:$0xff]  }
  0x25   :  { %871 = vmatprep.subr.bf16.mxu1 %v1521_v37  ;;  %v1607_v37 = vld [vmem:[%s2272_s1 + $0x310] ss:$8 sps:$4 sm:$0xff]  }
  0x27   :  { %831 = vmatpush2.bf16.msra.mxu0 %v1523_v38  ;;  %v1606_v38 = vld [vmem:[%s2272_s1 + $0x204] ss:$8 sps:$4 sm:$0xff]  }
  0x28   :  { %872 = vmatpush2.bf16.msra.mxu1 %v1524_v39  ;;  %832 = vmatprep.subr.bf16.mxu0 %v1525_v40  ;;  %v1615_v39 = vld [vmem:[%s2272_s1 + $0x304] ss:$8 sps:$4 sm:$0xff]   ;;  %v1604_v40 = vld [vmem:[%s2272_s1 + $0x200] ss:$8 sps:$4 sm:$0xff]  }
  0x29   :  { %873 = vmatprep.subr.bf16.mxu1 %v1527_v41  ;;  %v1613_v41 = vld [vmem:[%s2272_s1 + $0x300] ss:$8 sps:$4 sm:$0xff]  }
  0x2b   :  { %833 = vmatpush2.bf16.msra.mxu0 %v1529_v42  ;;  %v1612_v42 = vld [vmem:[%s2272_s1 + $0x2f4] ss:$8 sps:$4 sm:$0xff]  }
  0x2c   :  { %874 = vmatpush2.bf16.msra.mxu1 %v1530_v43  ;;  %834 = vmatprep.subr.bf16.mxu0 %v1531_v44  ;;  %v1621_v43 = vld [vmem:[%s2272_s1 + $0x3d4] ss:$8 sps:$4 sm:$0xff]   ;;  %v1610_v44 = vld [vmem:[%s2272_s1 + $0x2f0] ss:$8 sps:$4 sm:$0xff]  }
  0x2d   :  { %875 = vmatprep.subr.bf16.mxu1 %v1533_v45  ;;  %v1619_v45 = vld [vmem:[%s2272_s1 + $0x3d0] ss:$8 sps:$4 sm:$0xff]  }
  0x2f   :  { %835 = vmatpush2.bf16.msra.mxu0 %v1535_v49  ;;  %v1625_v49 = vld [vmem:[%s2272_s1 + $0x3c0] ss:$8 sps:$4 sm:$0xff]  }
  0x30   :  { %876 = vmatpush2.bf16.msra.mxu1 %v1536_v50  ;;  %836 = vmatprep.subr.bf16.mxu0 %v1537_v52  ;;  %v1624_v50 = vld [vmem:[%s2272_s1 + $0x2d4] ss:$8 sps:$4 sm:$0xff]   ;;  %v1622_v52 = vld [vmem:[%s2272_s1 + $0x2d0] ss:$8 sps:$4 sm:$0xff]  }
  0x31   :  { %877 = vmatprep.subr.bf16.mxu1 %v1539_v53  ;;  %v1631_v53 = vld [vmem:[%s2272_s1 + $0x3b0] ss:$8 sps:$4 sm:$0xff]  }
  0x33   :  { %837 = vmatpush2.bf16.msra.mxu0 %v1541_v54  ;;  %v1630_v54 = vld [vmem:[%s2272_s1 + $0x2c4] ss:$8 sps:$4 sm:$0xff]  }
  0x34   :  { %878 = vmatpush2.bf16.msra.mxu1 %v1542_v55  ;;  %838 = vmatprep.subr.bf16.mxu0 %v1543_v56  ;;  %v1639_v55 = vld [vmem:[%s2272_s1 + $0x3a4] ss:$8 sps:$4 sm:$0xff]   ;;  %v1628_v56 = vld [vmem:[%s2272_s1 + $0x2c0] ss:$8 sps:$4 sm:$0xff]  }
  0x35   :  { %879 = vmatprep.subr.bf16.mxu1 %v1545_v57  ;;  %v1637_v57 = vld [vmem:[%s2272_s1 + $0x3a0] ss:$8 sps:$4 sm:$0xff]  }
  0x37   :  { %839 = vmatpush2.bf16.msra.mxu0 %v1547_v58  ;;  %v1636_v58 = vld [vmem:[%s2272_s1 + $0x2b4] ss:$8 sps:$4 sm:$0xff]  }
  0x38   :  { %880 = vmatpush2.bf16.msra.mxu1 %v1548_v59  ;;  %840 = vmatprep.subr.bf16.mxu0 %v1549_v60  ;;  %v1645_v59 = vld [vmem:[%s2272_s1 + $0x394] ss:$8 sps:$4 sm:$0xff]   ;;  %v1634_v60 = vld [vmem:[%s2272_s1 + $0x2b0] ss:$8 sps:$4 sm:$0xff]  }
  0x39   :  { %881 = vmatprep.subr.bf16.mxu1 %v1551_v61  ;;  %v1643_v61 = vld [vmem:[%s2272_s1 + $0x390] ss:$8 sps:$4 sm:$0xff]  }
  0x3b   :  { %841 = vmatpush2.bf16.msra.mxu0 %v1553_v62  ;;  %v1642_v62 = vld [vmem:[%s2272_s1 + $0x2a4] ss:$8 sps:$4 sm:$0xff]  }
  0x3c   :  { %882 = vmatpush2.bf16.msra.mxu1 %v1554_v63  ;;  %842 = vmatprep.subr.bf16.mxu0 %v1555_v0  ;;  %v1651_v63 = vld [vmem:[%s2272_s1 + $0x384] ss:$8 sps:$4 sm:$0xff]   ;;  %v1640_v0 = vld [vmem:[%s2272_s1 + $0x2a0] ss:$8 sps:$4 sm:$0xff]  }
  0x3d   :  { %883 = vmatprep.subr.bf16.mxu1 %v1557_v1  ;;  %v1649_v1 = vld [vmem:[%s2272_s1 + $0x380] ss:$8 sps:$4 sm:$0xff]  }
  0x3f   :  { %843 = vmatpush2.bf16.msra.mxu0 %v1559_v2  ;;  %v1648_v2 = vld [vmem:[%s2272_s1 + $0x294] ss:$8 sps:$4 sm:$0xff]  }
  0x40   :  { %884 = vmatpush2.bf16.msra.mxu1 %v1560_v3  ;;  %894 = vmatprep.subr.bf16.mxu0 %v1567_v4  ;;  %v1305_v3 = vcombine.low %v1985_v28, %v1985_v28  ;;  %v1646_v4 = vld [vmem:[%s2272_s1 + $0x290] ss:$8 sps:$4 sm:$0xff]   ;;  %v1086_v28 = vld [vmem:[%s2274_s4 + $0xa8] sm:$0xff] }
  0x41   :  { %935 = vmatprep.subr.bf16.mxu1 %v1573_v5  ;;  %v1655_v5 = vld [vmem:[%s2272_s1 + $0x284] ss:$8 sps:$4 sm:$0xff]  }
  0x42   :  { %845 = vmatmul.mubr.bf16.vlgmr.msra.gmra.mxu0 %v1299_v6  ;;  %v1653_v6 = vld [vmem:[%s2272_s1 + $0x280] ss:$8 sps:$4 sm:$0xff]  }
  0x43   :  { %886 = vmatmul.mubr.bf16.vlgmr.msra.gmra.mxu1 %v1301_v7  ;;  %895 = vmatpush1.bf16.msra.mxu0 %v1565_v8  ;;  %v1303_v7 = vcombine.low %v1992_v30, %v1992_v30  ;;  %v1665_v8 = vmov 0.0  }
  0x44   :  { %936 = vmatpush1.bf16.msra.mxu1 %v1571_v9  ;;  %896 = vmatprep.subr.bf16.mxu0 %v1570_v10  ;;  %v1080_v9 = vld [vmem:[%s2274_s4 + $0x78] sm:$0xff]  ;;  %v1079_v10 = vld [vmem:[%s2274_s4 + $0x70] sm:$0xff] }
  0x45   :  { %937 = vmatprep.subr.bf16.mxu1 %v1579_v11  ;;  %1431 = vmatprep.mubr.msk.bf16.mxu1 %vm808_vm0, %v1306_v29  ;;  %v1078_v11 = vld [vmem:[%s2274_s4 + $0x68] sm:$0xff]  ;;  %v1085_v29 = vld [vmem:[%s2274_s4 + $0xa0] sm:$0xff] }
  0x46   :  { %926 = vmatprep.mubr.bf16.mxu0 %v1304_v33 }
  0x47   :  { %897 = vmatpush1.bf16.msra.mxu0 %v1568_v12  ;;  %v1077_v12 = vld [vmem:[%s2274_s4 + $0x60] sm:$0xff] }
  0x48   :  { %938 = vmatpush1.bf16.msra.mxu1 %v1577_v13  ;;  %898 = vmatprep.subr.bf16.mxu0 %v1576_v14  ;;  %v1076_v13 = vld [vmem:[%s2274_s4 + $0x58] sm:$0xff]  ;;  %v1075_v14 = vld [vmem:[%s2274_s4 + $0x50] sm:$0xff] }
  0x49   :  { %939 = vmatprep.subr.bf16.mxu1 %v1585_v15  ;;  %v1074_v15 = vld [vmem:[%s2274_s4 + $0x48] sm:$0xff] }
  0x4b   :  { %899 = vmatpush1.bf16.msra.mxu0 %v1574_v16  ;;  %v1073_v16 = vld [vmem:[%s2274_s4 + $0x40] sm:$0xff] }
  0x4c   :  { %940 = vmatpush1.bf16.msra.mxu1 %v1583_v17  ;;  %900 = vmatprep.subr.bf16.mxu0 %v1582_v18  ;;  %v1072_v17 = vld [vmem:[%s2274_s4 + $0x38] sm:$0xff]  ;;  %v1071_v18 = vld [vmem:[%s2274_s4 + $0x30] sm:$0xff] }
  0x4d   :  { %941 = vmatprep.subr.bf16.mxu1 %v1591_v19  ;;  %v1070_v19 = vld [vmem:[%s2274_s4 + $0x28] sm:$0xff] }
  0x4f   :  { %901 = vmatpush1.bf16.msra.mxu0 %v1580_v20  ;;  %v1069_v20 = vld [vmem:[%s2274_s4 + $0x20] sm:$0xff] }
  0x50   :  { %942 = vmatpush1.bf16.msra.mxu1 %v1589_v21  ;;  %902 = vmatprep.subr.bf16.mxu0 %v1588_v22  ;;  %v1068_v21 = vld [vmem:[%s2274_s4 + $0x18] sm:$0xff]  ;;  %v1067_v22 = vld [vmem:[%s2274_s4 + $0x10] sm:$0xff] }
  0x51   :  { %943 = vmatprep.subr.bf16.mxu1 %v1597_v23  ;;  %v1066_v23 = vld [vmem:[%s2274_s4 + $0x8] sm:$0xff] }
  0x53   :  { %903 = vmatpush1.bf16.msra.mxu0 %v1586_v24  ;;  %v1065_v24 = vld [vmem:[%s2274_s4] sm:$0xff] }
  0x54   :  { %944 = vmatpush1.bf16.msra.mxu1 %v1595_v25  ;;  %904 = vmatprep.subr.bf16.mxu0 %v1594_v26  ;;  %v1089_v25 = vld [vmem:[%s2274_s4 + $0xc0] sm:$0xff]  ;;  %v1088_v26 = vld [vmem:[%s2274_s4 + $0xb8] sm:$0xff] }
  0x55   :  { %945 = vmatprep.subr.bf16.mxu1 %v1603_v27  ;;  %v1087_v27 = vld [vmem:[%s2274_s4 + $0xb0] sm:$0xff] }
  0x57   :  { %905 = vmatpush1.bf16.msra.mxu0 %v1592_v31 }
  0x58   :  { %946 = vmatpush1.bf16.msra.mxu1 %v1601_v32  ;;  %906 = vmatprep.subr.bf16.mxu0 %v1600_v34  ;;  %v1084_v32 = vld [vmem:[%s2274_s4 + $0x98] sm:$0xff] }
  0x59   :  { %947 = vmatprep.subr.bf16.mxu1 %v1609_v35 }
  0x5b   :  { %907 = vmatpush1.bf16.msra.mxu0 %v1598_v36  ;;  %v1083_v36 = vld [vmem:[%s2274_s4 + $0x90] sm:$0xff] }
  0x5c   :  { %948 = vmatpush1.bf16.msra.mxu1 %v1607_v37  ;;  %908 = vmatprep.subr.bf16.mxu0 %v1606_v38 }
  0x5d   :  { %949 = vmatprep.subr.bf16.mxu1 %v1615_v39  ;;  %v1082_v39 = vld [vmem:[%s2274_s4 + $0x88] sm:$0xff] }
  0x5f   :  { %909 = vmatpush1.bf16.msra.mxu0 %v1604_v40 }
  0x60   :  { %950 = vmatpush1.bf16.msra.mxu1 %v1613_v41  ;;  %910 = vmatprep.subr.bf16.mxu0 %v1612_v42  ;;  %v1081_v42 = vld [vmem:[%s2274_s4 + $0x80] sm:$0xff] }
  0x61   :  { %955 = vmatprep.subr.bf16.mxu1 %v1621_v43 }
  0x63   :  { %911 = vmatpush2.bf16.msra.mxu0 %v1610_v44 }
  0x64   :  { %956 = vmatpush2.bf16.msra.mxu1 %v1619_v45  ;;  %912 = vmatprep.subr.bf16.mxu0 %v1618_v46 }
  0x65   :  { %957 = vmatprep.subr.bf16.mxu1 %v1627_v47 }
  0x67   :  { %913 = vmatpush2.bf16.msra.mxu0 %v1616_v48 }
  0x68   :  { %958 = vmatpush2.bf16.msra.mxu1 %v1625_v49  ;;  %914 = vmatprep.subr.bf16.mxu0 %v1624_v50 }
  0x69   :  { %959 = vmatprep.subr.bf16.mxu1 %v1633_v51 }
  0x6b   :  { %915 = vmatpush2.bf16.msra.mxu0 %v1622_v52 }
  0x6c   :  { %960 = vmatpush2.bf16.msra.mxu1 %v1631_v53  ;;  %916 = vmatprep.subr.bf16.mxu0 %v1630_v54 }
  0x6d   :  { %961 = vmatprep.subr.bf16.mxu1 %v1639_v55 }
  0x6f   :  { %917 = vmatpush2.bf16.msra.mxu0 %v1628_v56 }
  0x70   :  { %962 = vmatpush2.bf16.msra.mxu1 %v1637_v57  ;;  %918 = vmatprep.subr.bf16.mxu0 %v1636_v58 }
  0x71   :  { %963 = vmatprep.subr.bf16.mxu1 %v1645_v59 }
  0x73   :  { %919 = vmatpush2.bf16.msra.mxu0 %v1634_v60 }
  0x74   :  { %964 = vmatpush2.bf16.msra.mxu1 %v1643_v61  ;;  %920 = vmatprep.subr.bf16.mxu0 %v1642_v62 }
  0x75   :  { %965 = vmatprep.subr.bf16.mxu1 %v1651_v63 }
  0x77   :  { %921 = vmatpush2.bf16.msra.mxu0 %v1640_v0 }
  0x78   :  { %966 = vmatpush2.bf16.msra.mxu1 %v1649_v1  ;;  %922 = vmatprep.subr.bf16.mxu0 %v1648_v2 }
  0x79   :  { %1093 = vmatprep.subr.mxu1 %v1665_v8 }
  0x7b   :  { %968 = vmatmul.mubr.bf16.vlgmr.msra.gmra.mxu1 %v1305_v3  ;;  %923 = vmatpush2.bf16.msra.mxu0 %v1646_v4 }
  0x7c   :  { %924 = vmatprep.subr.bf16.mxu0 %v1655_v5  ;;  %1094 = vmatpush1.msra.mxu1 %v1080_v9 }
  0x7d   :  { %1095 = vmatprep.subr.mxu1 %v1665_v8 }
  0x7e   :  { %1096 = vmatpush1.msra.mxu1 %v1079_v10 }
  0x7f   :  { %925 = vmatpush2.bf16.msra.mxu0 %v1653_v6  ;;  %1097 = vmatprep.subr.mxu1 %v1665_v8 }
  0x80   :  { %1445 = vmatprep.subr.mxu0 %v1665_v8  ;;  %1098 = vmatpush1.msra.mxu1 %v1078_v11 }
  0x81   :  { %1099 = vmatprep.subr.mxu1 %v1665_v8 }
  0x82   :  { %927 = vmatmul.mubr.bf16.vlgmr.msra.gmra.mxu0 %v1303_v7  ;;  %1100 = vmatpush1.msra.mxu1 %v1077_v12 }
  0x83   :  { %1101 = vmatprep.subr.mxu1 %v1665_v8  ;;  %1459 = vmatprep.mubr.msk.f32.mxu0 %vm1667_vm3, %v1665_v8 }
  0x84   :  { %1102 = vmatpush1.msra.mxu1 %v1076_v13 }
  0x85   :  { %1103 = vmatprep.subr.mxu1 %v1665_v8 }
  0x86   :  { %1104 = vmatpush1.msra.mxu1 %v1075_v14 }
  0x87   :  { %1105 = vmatprep.subr.mxu1 %v1665_v8 }
  0x88   :  { %1106 = vmatpush1.msra.mxu1 %v1074_v15 }
  0x89   :  { %1107 = vmatprep.subr.mxu1 %v1665_v8 }
  0x8a   :  { %1108 = vmatpush1.msra.mxu1 %v1073_v16 }
  0x8b   :  { %1109 = vmatprep.subr.mxu1 %v1665_v8 }
  0x8c   :  { %1110 = vmatpush1.msra.mxu1 %v1072_v17 }
  0x8d   :  { %1111 = vmatprep.subr.mxu1 %v1665_v8 }
  0x8e   :  { %1112 = vmatpush1.msra.mxu1 %v1071_v18 }
  0x8f   :  { %1113 = vmatprep.subr.mxu1 %v1665_v8 }
  0x90   :  { %1114 = vmatpush1.msra.mxu1 %v1070_v19 }
  0x91   :  { %1115 = vmatprep.subr.mxu1 %v1665_v8 }
  0x92   :  { %1116 = vmatpush1.msra.mxu1 %v1069_v20 }
  0x93   :  { %1117 = vmatprep.subr.mxu1 %v1665_v8 }
  0x94   :  { %1118 = vmatpush1.msra.mxu1 %v1068_v21 }
  0x95   :  { %1119 = vmatprep.subr.mxu1 %v1665_v8 }
  0x96   :  { %1120 = vmatpush1.msra.mxu1 %v1067_v22 }
  0x97   :  { %1121 = vmatprep.subr.mxu1 %v1665_v8 }
  0x98   :  { %1122 = vmatpush1.msra.mxu1 %v1066_v23 }
  0x99   :  { %1123 = vmatprep.subr.mxu1 %v1665_v8 }
  0x9a   :  { %1124 = vmatpush1.msra.mxu1 %v1065_v24 }
  0x9b   :  { %1139 = vmatprep.subr.mxu1 %v1665_v8 }
  0x9c   :  { %1140 = vmatpush2.msra.mxu1 %v1089_v25 }
  0x9d   :  { %1141 = vmatprep.subr.mxu1 %v1665_v8 }
  0x9e   :  { %1142 = vmatpush2.msra.mxu1 %v1088_v26 }
  0x9f   :  { %1143 = vmatprep.subr.mxu1 %v1665_v8 }
  0xa0   :  { %1144 = vmatpush2.msra.mxu1 %v1087_v27 }
  0xa1   :  { %1145 = vmatprep.subr.mxu1 %v1665_v8 }
  0xa2   :  { %1146 = vmatpush2.msra.mxu1 %v1086_v28 }
  0xa3   :  { %1147 = vmatprep.subr.mxu1 %v1665_v8 }
  0xa4   :  { %1148 = vmatpush2.msra.mxu1 %v1085_v29  ;;  %v1666_v29 = vmov 1966171168  }
  0xa5   :  { %1149 = vmatprep.subr.mxu1 %v1665_v8 }
  0xa6   :  { %1150 = vmatpush2.msra.mxu1 %v1084_v32 }
  0xa7   :  { %1151 = vmatprep.subr.mxu1 %v1665_v8 }
  0xa8   :  { %1152 = vmatpush2.msra.mxu1 %v1083_v36 }
  0xa9   :  { %1153 = vmatprep.subr.mxu1 %v1665_v8 }
  0xaa   :  { %1154 = vmatpush2.msra.mxu1 %v1082_v39  ;;  %v976_v39 = vld [vmem:[%s2275_s2] sm:$0x3] }
  0xab   :  { %1155 = vmatprep.subr.mxu1 %v1665_v8 }
  0xac   :  { %1156 = vmatpush2.msra.mxu1 %v1081_v42 }
 0x102   :  { %v846_v30 = vpop.f32.mrf.mxu0 }
 0x103   :  { %v887_v31 = vpop.f32.mrf.mxu1 }
 0x104   :  { %v888_v33 = vadd.f32 %v887_v31, %v846_v30  ;;  %v848_v34 = vpop.f32.mrf.mxu0  ;;  %v1022_v30 = vunpack.c.l.s4 %v1666_v29  ;;  %v1024_v31 = vlaneseq }
 0x105   :  { %v889_v35 = vpop.f32.mrf.mxu1 }
 0x106   :  { %v850_v37 = vpop.f32.mrf.mxu0  ;;  %v890_v48 = vadd.f32 %v889_v35, %v848_v34  ;;  %v1023_v32 = vunpack.c.0.s8 %v1022_v30 }
 0x107   :  { %v891_v38 = vpop.f32.mrf.mxu1 }
 0x108   :  { %v851_v40 = vpop.f32.mrf.mxu0 }
 0x109   :  { %v892_v41 = vpop.f32.mrf.mxu1 }
 0x13b   :  { %v969_v43 = vpop.f32.mrf.mxu1 }
 0x13d   :  { %v971_v44 = vpop.f32.mrf.mxu1 }
 0x13f   :  { %v973_v45 = vpop.f32.mrf.mxu1 }
 0x141   :  { %v974_v46 = vpop.f32.mrf.mxu1 }
 0x142   :  { %v928_v47 = vpop.f32.mrf.mxu0 }
 0x143   :  { %v929_v49 = vadd.f32 %v928_v47, %v888_v33  ;;  %v1025_v33 = vshrl.u32 %v1024_v31, 7 }
 0x144   :  { %v930_v50 = vpop.f32.mrf.mxu0 }
 0x145   :  { %v970_v51 = vadd.f32 %v969_v43, %v929_v49  ;;  %v931_v52 = vadd.f32 %v930_v50, %v890_v48  ;;  %v1026_v35 = vsub.s32 %v1023_v32, %v1025_v33  ;;  %v1044_v41 = vsub.s32 1, %v1025_v33  ;;  %v977_v43 = vld [vmem:[%s2276_s3] sm:$0x3] }
 0x146   :  { %v932_v53 = vpop.f32.mrf.mxu0  ;;  %v2220_v42 = vsub.s32 0, %v1025_v33 }
 0x147   :  { %v978_v54 = vrot.slane %v970_v51, 4  ;;  %v972_v55 = vadd.f32 %v971_v44, %v931_v52  ;;  %v1058_v46 = vrot.slane %v977_v43, %v1044_v41 }
 0x148   :  { %v933_v56 = vpop.f32.mrf.mxu0  ;;  %v1054_v48 = vrot.slane %v977_v43, %v2220_v42 }
 0x149   :  { %v979_v57 = vadd.f32 %v978_v54, %v970_v51  ;;  %v985_v58 = vsel %vm984_vm1, %v972_v55, 0.0  ;;  %v1207_v56 = vld [vmem:[%s2277_s7 + $0x28] sm:$0xff] }
 0x14a   :  { %v986_v59 = vrot.slane %v985_v58, 4 }
 0x14b   :  { %v980_v60 = vrot.slane %v979_v57, 2 }
 0x14c   :  { %v987_v61 = vadd.f32 %v986_v59, %v985_v58  ;;  %v1205_v58 = vld [vmem:[%s2277_s7 + $0x18] sm:$0xff]  ;;  %v1204_v59 = vld [vmem:[%s2277_s7 + $0x10] sm:$0xff] }
 0x14d   :  { %v981_v62 = vadd.f32 %v980_v60, %v979_v57  ;;  %v1206_v57 = vld [vmem:[%s2277_s7 + $0x20] sm:$0xff]  ;;  %v1203_v60 = vld [vmem:[%s2277_s7 + $0x8] sm:$0xff] }
 0x14e   :  { %v988_v63 = vrot.slane %v987_v61, 2 }
 0x14f   :  { %v982_v0 = vrot.slane %v981_v62, 1 }
 0x150   :  { %v989_v1 = vadd.f32 %v988_v63, %v987_v61  ;;  %v1202_v61 = vld [vmem:[%s2277_s7] sm:$0xff] }
 0x151   :  { %v983_v2 = vadd.f32 %v982_v0, %v981_v62 }
 0x152   :  { %v990_v3 = vrot.slane %v989_v1, 1 }
 0x153   :  { %v993_v4 = vmul.f32 0.125, %v983_v2 }
 0x154   :  { %v991_v5 = vadd.f32 %v990_v3, %v989_v1 }
 0x155   :  { %v995_v6 = vsub.f32 %v970_v51, %v993_v4 }
 0x156   :  { %v994_v7 = vmul.f32 0.125, %v991_v5 }
 0x157   :  { %v997_v9 = vmul.f32 %v995_v6, %v995_v6 }
 0x158   :  { %v996_v10 = vsub.f32 %v972_v55, %v994_v7  ;;  %v1208_v55 = vld [vmem:[%s2277_s7 + $0x30] sm:$0x3] }
 0x159   :  { %v999_v11 = vrot.slane %v997_v9, 4  ;;  %1446 = vmatpush3.msk.msra.mxu0 %vm1219_vm2, %v1208_v55 }
 0x15a   :  { %v998_v12 = vmul.f32 %v996_v10, %v996_v10  ;;  %1447 = vmatprep.subr.mxu0 %v1665_v8 }
 0x15b   :  { %v1000_v13 = vadd.f32 %v999_v11, %v997_v9  ;;  %1448 = vmatpush3.msra.mxu0 %v1207_v56 }
 0x15c   :  { %v1005_v14 = vsel %vm984_vm1, %v998_v12, 0.0  ;;  %1449 = vmatprep.subr.mxu0 %v1665_v8 }
 0x15d   :  { %v1001_v15 = vrot.slane %v1000_v13, 2  ;;  %v1006_v16 = vrot.slane %v1005_v14, 4  ;;  %1450 = vmatpush3.msra.mxu0 %v1206_v57 }
 0x15e   :  { %1451 = vmatprep.subr.mxu0 %v1665_v8 }
 0x15f   :  { %v1002_v17 = vadd.f32 %v1001_v15, %v1000_v13  ;;  %v1007_v18 = vadd.f32 %v1006_v16, %v1005_v14  ;;  %1452 = vmatpush3.msra.mxu0 %v1205_v58 }
 0x160   :  { %1453 = vmatprep.subr.mxu0 %v1665_v8 }
 0x161   :  { %v1003_v19 = vrot.slane %v1002_v17, 1  ;;  %v1008_v20 = vrot.slane %v1007_v18, 2  ;;  %1454 = vmatpush3.msra.mxu0 %v1204_v59 }
 0x162   :  { %1455 = vmatprep.subr.mxu0 %v1665_v8 }
 0x163   :  { %v1004_v21 = vadd.f32 %v1003_v19, %v1002_v17  ;;  %v1009_v22 = vadd.f32 %v1008_v20, %v1007_v18  ;;  %1456 = vmatpush3.msra.mxu0 %v1203_v60  ;;  %v1163_v19 = vld [vmem:[%s2278_s5] sm:$0x1] }
 0x164   :  { %1457 = vmatprep.subr.mxu0 %v1665_v8 }
 0x165   :  { %v1012_v23 = vmul.f32 0.125, %v1004_v21  ;;  %v1010_v24 = vrot.slane %v1009_v22, 1  ;;  %1458 = vmatpush3.msra.mxu0 %v1202_v61 }
 0x167   :  { %v1011_v25 = vadd.f32 %v1010_v24, %v1009_v22  ;;  %v1014_v26 = vadd.f32 1e-05, %v1012_v23  ;;  %v1433_v23 = vld [vmem:[%s2279_s6] ss:$0 sm:$0xff] }
 0x169   :  { %v1013_v27 = vmul.f32 0.125, %v1011_v25  ;;  %1659 = vrsqrt.f32 %v1014_v26 }
 0x16b   :  { %v1015_v28 = vadd.f32 1e-05, %v1013_v27  ;;  %v1434_v27 = vld [vmem:[%s2280_s8] ss:$0 sm:$0xff] }
 0x16d   :  { %1661 = vrsqrt.f32 %v1015_v28 }
 0x176   :  { %v1660_v34 = vpop.eup %1659 }
 0x17a   :  { %v1662_v36 = vpop.eup %1661 }
 0x17b   :  { %v1020_v37 = vcombine.low %v1660_v34, %v1662_v36 }
 0x17d   :  { %v1027_v38 = vrot.slane %v1020_v37, %v1026_v35 }
 0x17f   :  { %v1034_v40 = vrot.slane %v1027_v38, %v1026_v35 }
 0x181   :  { %v1036_v44 = vmul.f32 %v1034_v40, %v976_v39 }
 0x183   :  { %v1045_v45 = vrot.slane %v1036_v44, %v1044_v41  ;;  %v1041_v47 = vrot.slane %v1036_v44, %v2220_v42 }
 0x185   :  { %v1049_v49 = vmul.f32 %v1045_v45, %v996_v10  ;;  %v1048_v50 = vmul.f32 %v1041_v47, %v995_v6 }
 0x187   :  { %v1062_v51 = vadd.f32 %v1058_v46, %v1049_v49  ;;  %v1061_v52 = vadd.f32 %v1054_v48, %v1048_v50 }
 0x189   :  { %v1064_v53 = vmax.f32 %v1062_v51, 0.0  ;;  %v1063_v54 = vmax.f32 %v1061_v52, 0.0 }
 0x18b   :  { %1432 = vmatprep.mubr.msk.f32.mxu1 %vm984_vm1, %v1064_v53 }
 0x18c   :  { %1158 = vmatmul.mubr.f32.vlgmr.msra.gmra.mxu1 %v1063_v54 }
 0x24c   :  { %v1159_v62 = vpop.f32.mrf.mxu1 }
 0x24d   :  { %v1166_v63 = vsel %vm1165_vm4, %v1159_v62, 0.0 }
 0x24e   :  { %v1167_v0 = vrot.slane %v1166_v63, 4  ;;  %v1161_v1 = vpop.f32.mrf.mxu1 }
 0x250   :  { %v1168_v2 = vadd.f32 %v1167_v0, %v1166_v63 }
 0x252   :  { %v1169_v3 = vrot.slane %v1168_v2, 2 }
 0x254   :  { %v1170_v4 = vadd.f32 %v1169_v3, %v1168_v2 }
 0x256   :  { %v1171_v5 = vrot.slane %v1170_v4, 1 }
 0x258   :  { %v1172_v6 = vadd.f32 %v1171_v5, %v1170_v4 }
 0x25a   :  { %v1173_v7 = vmul.f32 0.125, %v1172_v6 }
 0x25c   :  { %v1174_v9 = vsub.f32 %v1159_v62, %v1173_v7 }
 0x25e   :  { %v1175_v10 = vmul.f32 %v1174_v9, %v1174_v9 }
 0x260   :  { %v1176_v11 = vsel %vm1165_vm4, %v1175_v10, 0.0 }
 0x261   :  { %v1177_v12 = vrot.slane %v1176_v11, 4 }
 0x263   :  { %v1178_v13 = vadd.f32 %v1177_v12, %v1176_v11 }
 0x265   :  { %v1179_v14 = vrot.slane %v1178_v13, 2 }
 0x267   :  { %v1180_v8 = vadd.f32 %v1179_v14, %v1178_v13 }
 0x269   :  { %v1181_v15 = vrot.slane %v1180_v8, 1 }
 0x26b   :  { %v1182_v16 = vadd.f32 %v1181_v15, %v1180_v8 }
 0x26d   :  { %v1183_v17 = vmul.f32 0.125, %v1182_v16 }
 0x26f   :  { %v1184_v18 = vadd.f32 1e-05, %v1183_v17 }
 0x271   :  { %1663 = vrsqrt.f32 %v1184_v18 }
 0x27e   :  { %v1664_v20 = vpop.eup %1663 }
 0x27f   :  { %v1186_v21 = vmul.f32 %v1664_v20, %v1163_v19 }
 0x281   :  { %v1191_v22 = vrot.slane %v1186_v21, %v2220_v42 }
 0x283   :  { %v1193_v24 = vmul.f32 %v1191_v22, %v1174_v9 }
 0x285   :  { %v1200_v25 = vadd.f32 %v1433_v23, %v1193_v24 }
 0x287   :  { %v1201_v26 = vmax.f32 %v1200_v25, 0.0 }
 0x289   :  { %1460 = vmatmul.mubr.msk.f32.vlgmr.msra.gmra.mxu0 %vm1165_vm4, %v1201_v26 }
 0x349   :  { %v1289_v28 = vpop.f32.mrf.mxu0 }
 0x34a   :  { %v1290_v29 = vadd.f32 %v1434_v27, %v1289_v28 }
 0x34b   :  { %v1461_v30 = vpop.f32.mrf.mxu0 }
 0x34c   :  { %1294 = vst.msk [vmem:[%s2281_s9] sm:$0xff] %vm1293_vm5, %v1290_v29 }

</bundles_post_ra>
